<compile_context>
chip_gen: v5e
topology: v5e:2x2
jax: 0.10.0
libtpu: 0.0.40
codegen_flags: <defaults>
</compile_context>

<pallas_src>
import functools

import jax
import jax.numpy as jnp
from jax.experimental import pallas as pl
from jax.experimental.pallas import tpu as pltpu


_LANE = 128                         # vreg lane width
_SUBLANE = 8                        # f32 sublane count
_NEG_INF = -1e30
_VMEM_BUDGET_BYTES = 48 * 1024 * 1024   # fits v7x (64 MiB/TC) with headroom


def _round_up(x, m):
    return ((x + m - 1) // m) * m


def mlp_kernel(x_ref, w1_ref, b1_ref, w2_ref, b2_ref, o_ref, *, activation):
    # x_ref:  [TILE_N, F]       compute dtype (f32 or bf16), F unpadded
    # w1_ref: [F, H_pad]        compute dtype (resident across the grid)
    # b1_ref: [1, H_pad]        f32
    # w2_ref: [H_pad, C_pad]    compute dtype (resident across the grid)
    # b2_ref: [1, C_pad]        f32 (padded class columns carry -1e30)
    # o_ref:  [TILE_N, C_pad]   log-probabilities (padded cols invalid)
    x = x_ref[...]
    w1 = w1_ref[...]
    w2 = w2_ref[...]

    # fc1 + activation (MXU matmul, f32 accumulation).
    h = jnp.dot(x, w1, preferred_element_type=jnp.float32) + b1_ref[...]
    if activation == "relu":
        h = jnp.maximum(h, 0.0)
    else:  # "elu" (alpha=1.0); exp goes to the EUP (free slot).
        # Clamp so the unselected branch never produces inf for large h.
        h = jnp.where(h > 0.0, h, jnp.exp(jnp.minimum(h, 0.0)) - 1.0)

    # fc2 (cast activations back to the matmul compute dtype).
    logits = jnp.dot(h.astype(w2.dtype), w2,
                     preferred_element_type=jnp.float32) + b2_ref[...]

    # Numerically-stable log_softmax over the lane-padded class axis.
    # Padded columns hold -1e30: they never win the max and exp() underflows
    # to exactly 0, so the logsumexp over valid classes is unaffected.
    m = jnp.max(logits, axis=-1, keepdims=True)
    s = logits - m
    lse = jnp.log(jnp.sum(jnp.exp(s), axis=-1, keepdims=True))
    o_ref[...] = (s - lse).astype(o_ref.dtype)


def prepare_mlp_params(w1, b1, w2, b2, *, compute_dtype=jnp.bfloat16,
                       lane_multiple=_LANE):
    """One-time conversion of PyTorch-layout params (weight is [out, in]) into
    pre-transposed, lane-padded arrays. Run at model load, NOT per forward.

    Only the hidden / class axes are lane-padded; the F contraction axis stays
    unpadded so x can stream without a host-side pad pass.  lane_multiple=256
    can help on v6e/v7x (2x256^2 MXU) once H, C >= 256 and the kernel is
    MXU-bound; 128 is already optimal for v5e.
    """
    H, F = w1.shape
    C, _ = w2.shape
    h_pad = _round_up(H, lane_multiple)
    c_pad = _round_up(C, lane_multiple)

    w1_t = jnp.zeros((F, h_pad), compute_dtype).at[:, :H].set(
        jnp.transpose(w1).astype(compute_dtype))
    w2_t = jnp.zeros((h_pad, c_pad), compute_dtype).at[:H, :C].set(
        jnp.transpose(w2).astype(compute_dtype))
    b1_p = jnp.zeros((1, h_pad), jnp.float32).at[0, :H].set(
        b1.astype(jnp.float32))
    # Padded class columns get a hugely negative bias so they cannot corrupt
    # the max / logsumexp.  Must stay f32 (bf16 would turn -1e30 into -inf).
    b2_p = jnp.full((1, c_pad), _NEG_INF, jnp.float32).at[0, :C].set(
        b2.astype(jnp.float32))
    return w1_t, b1_p, w2_t, b2_p, C


def _pick_row_tile(N, F, h_pad, c_pad, comp_bytes, out_bytes, tile_n,
                   x_buffer_count, vmem_budget_bytes):
    """Largest row tile that (a) fits the VMEM budget, (b) keeps >= 2 grid
    steps when N allows it (both TensorCores busy on v7x)."""
    fixed = ((F * h_pad + h_pad * c_pad) * comp_bytes     # resident weights
             + (h_pad + c_pad) * 4)                       # resident biases
    per_row = (max(x_buffer_count, 2) * F * comp_bytes    # streamed x buffers
               + 2 * c_pad * out_bytes                    # output buffers
               + h_pad * 4 + c_pad * 4)                   # h / logits temps
    avail = vmem_budget_bytes - fixed - (2 << 20)         # 2 MiB slack
    if avail < per_row * _SUBLANE:
        max_rows = _SUBLANE
    else:
        max_rows = (avail // per_row) // _SUBLANE * _SUBLANE

    tn = min(tile_n, _round_up(N, _SUBLANE), max_rows)
    # >= 2 grid steps so the "parallel" axis can shard across both TCs (v7x).
    tn = min(tn, _round_up(pl.cdiv(N, 2), _SUBLANE))
    return max(tn, _SUBLANE)


def mlp_forward(x, w1_t, b1_p, w2_t, b2_p, num_classes, *,
                activation="relu", tile_n=512, out_dtype=jnp.float32,
                x_buffer_count=2, unpad_output=True,
                vmem_budget_bytes=_VMEM_BUDGET_BYTES):
    """x: [N, F] float; params from prepare_mlp_params.

    Returns [N, num_classes] (or the padded [N, c_pad] slab when
    unpad_output=False, which avoids an extra copy pass over the output).
    x_buffer_count=3 can hide DMA jitter on v5e if profiling shows exposed DMA.
    """
    assert activation in ("relu", "elu")
    N, F = x.shape
    f_w, h_pad = w1_t.shape
    assert f_w == F, "w1_t contraction dim must match x features"
    _, c_pad = w2_t.shape
    compute_dtype = w1_t.dtype

    # Cast only (no feature padding pass); bf16 halves the streamed-x traffic.
    x_c = x.astype(compute_dtype)

    comp_bytes = jnp.dtype(compute_dtype).itemsize
    out_bytes = jnp.dtype(out_dtype).itemsize
    tn = _pick_row_tile(N, F, h_pad, c_pad, comp_bytes, out_bytes, tile_n,
                        x_buffer_count, vmem_budget_bytes)
    grid = (pl.cdiv(N, tn),)

    flops = 2 * N * (F * h_pad + h_pad * c_pad)
    transcendentals = N * c_pad + (N * h_pad if activation == "elu" else 0)
    bytes_accessed = (x_c.size * comp_bytes
                      + (w1_t.size + w2_t.size) * comp_bytes
                      + (b1_p.size + b2_p.size) * 4
                      + N * c_pad * out_bytes)

    def run(use_pipeline_mode):
        def spec(shape, index_map, buffer_count):
            if use_pipeline_mode and buffer_count is not None:
                return pl.BlockSpec(shape, index_map,
                                    pipeline_mode=pl.Buffered(buffer_count))
            return pl.BlockSpec(shape, index_map)

        # x: streamed row tile (default double-buffered; deeper on request).
        x_bufs = None if x_buffer_count == 2 else x_buffer_count
        in_specs = [
            spec((tn, F), lambda i: (i, 0), x_bufs),
            # Weights / biases: constant block index -> resident, single
            # buffer (no wasted second VMEM copy).
            spec((F, h_pad), lambda i: (0, 0), 1),
            spec((1, h_pad), lambda i: (0, 0), 1),
            spec((h_pad, c_pad), lambda i: (0, 0), 1),
            spec((1, c_pad), lambda i: (0, 0), 1),
        ]
        return pl.pallas_call(
            functools.partial(mlp_kernel, activation=activation),
            out_shape=jax.ShapeDtypeStruct((N, c_pad), out_dtype),
            grid_spec=pltpu.PrefetchScalarGridSpec(
                num_scalar_prefetch=0,
                grid=grid,
                in_specs=in_specs,
                out_specs=pl.BlockSpec((tn, c_pad), lambda i: (i, 0)),
            ),
            compiler_params=pltpu.CompilerParams(
                dimension_semantics=("parallel",),
                vmem_limit_bytes=int(vmem_budget_bytes)),
            cost_estimate=pl.CostEstimate(
                flops=flops,
                transcendentals=transcendentals,
                bytes_accessed=bytes_accessed),
        )(x_c, w1_t, b1_p, w2_t, b2_p)

    try:
        out = run(use_pipeline_mode=True)
    except Exception:
        # Fallback for JAX builds without BlockSpec pipeline_mode / Buffered
        # support: identical math, default (double) buffering everywhere.
        out = run(use_pipeline_mode=False)

    if unpad_output and c_pad != num_classes:
        return out[:, :num_classes]
    return out


if __name__ == "__main__":
    # Small, forward-consistent shapes.  N=12 exercises a 2-step grid
    # (tn=8) including a masked partial last row tile.
    N = 12
    num_features = 16
    hidden_size = 32
    num_classes = 8

    key = jax.random.PRNGKey(0)
    kx, kw1, kb1, kw2, kb2 = jax.random.split(key, 5)

    x = jax.random.normal(kx, (N, num_features), dtype=jnp.float32)

    # PyTorch Linear layout: weight [out, in], bias [out].
    w1 = jax.random.normal(kw1, (hidden_size, num_features), jnp.float32) * 0.1
    b1 = jax.random.normal(kb1, (hidden_size,), jnp.float32) * 0.1
    w2 = jax.random.normal(kw2, (num_classes, hidden_size), jnp.float32) * 0.1
    b2 = jax.random.normal(kb2, (num_classes,), jnp.float32) * 0.1

    def ref_forward(activation):
        h = x @ w1.T + b1
        h = jnp.maximum(h, 0.0) if activation == "relu" else jax.nn.elu(h)
        return jax.nn.log_softmax(h @ w2.T + b2, axis=1)

    for activation in ("relu", "elu"):
        ref = ref_forward(activation)

        # Full-precision path: tight check.
        params_f32 = prepare_mlp_params(w1, b1, w2, b2,
                                        compute_dtype=jnp.float32)
        out_f32 = jax.block_until_ready(
            mlp_forward(x, *params_f32, activation=activation))
        assert out_f32.shape == (N, num_classes)
        assert jnp.allclose(out_f32, ref, atol=1e-4, rtol=1e-4), \
            f"f32 {activation} mismatch"

        # bf16 streaming + bf16 output (halves HBM read & write): loose check.
        params_bf16 = prepare_mlp_params(w1, b1, w2, b2,
                                         compute_dtype=jnp.bfloat16)
        out_bf16 = jax.block_until_ready(
            mlp_forward(x, *params_bf16, activation=activation,
                        out_dtype=jnp.bfloat16))
        assert out_bf16.shape == (N, num_classes)
        assert out_bf16.dtype == jnp.bfloat16
        assert jnp.allclose(out_bf16.astype(jnp.float32), ref,
                            atol=5e-2, rtol=5e-2), f"bf16 {activation} mismatch"

    print("KERNEL_OK")
</pallas_src>

<mosaic_0001>
module attributes {stable_mosaic.version = 11 : i64} {
  func.func @mlp_kernel(%arg0: i32, %arg1: memref<8x16xf32, #tpu.memory_space<vmem>>, %arg2: memref<16x128xf32, #tpu.memory_space<vmem>>, %arg3: memref<1x128xf32, #tpu.memory_space<vmem>>, %arg4: memref<128x128xf32, #tpu.memory_space<vmem>>, %arg5: memref<1x128xf32, #tpu.memory_space<vmem>>, %arg6: memref<8x128xf32, #tpu.memory_space<vmem>>) attributes {dimension_semantics = [#tpu.dimension_semantics<parallel>], iteration_bounds = array<i64: 2>, scalar_prefetch = 0 : i64, scratch_operands = 0 : i64, tpu.core_type = #tpu.core_type<tc>, window_params = [{transform_indices = @transform_0, window_bounds = array<i64: 8, 16>}, {pipeline_mode = #tpu.pipeline_mode<synchronous>, transform_indices = @transform_1, window_bounds = array<i64: 16, 128>}, {pipeline_mode = #tpu.pipeline_mode<synchronous>, transform_indices = @transform_2, window_bounds = array<i64: 1, 128>}, {pipeline_mode = #tpu.pipeline_mode<synchronous>, transform_indices = @transform_3, window_bounds = array<i64: 128, 128>}, {pipeline_mode = #tpu.pipeline_mode<synchronous>, transform_indices = @transform_4, window_bounds = array<i64: 1, 128>}, {transform_indices = @transform_5, window_bounds = array<i64: 8, 128>}]} {
    %c0 = arith.constant 0 : index
    %c0_0 = arith.constant 0 : index
    %0 = vector.load %arg1[%c0, %c0_0] : memref<8x16xf32, #tpu.memory_space<vmem>>, vector<8x16xf32>
    %c0_1 = arith.constant 0 : index
    %c0_2 = arith.constant 0 : index
    %1 = vector.load %arg2[%c0_1, %c0_2] : memref<16x128xf32, #tpu.memory_space<vmem>>, vector<16x128xf32>
    %c0_3 = arith.constant 0 : index
    %c0_4 = arith.constant 0 : index
    %2 = vector.load %arg4[%c0_3, %c0_4] : memref<128x128xf32, #tpu.memory_space<vmem>>, vector<128x128xf32>
    %cst = arith.constant dense<0.000000e+00> : vector<8x128xf32>
    %3 = tpu.matmul %0, %1, %cst {dimension_numbers = #tpu.dot_dimension_numbers<[1], [0], [0], [1], [0, 0, 1, 1], [], []>} : vector<8x16xf32>, vector<16x128xf32>, vector<8x128xf32> -> vector<8x128xf32>
    %c0_5 = arith.constant 0 : index
    %c0_6 = arith.constant 0 : index
    %4 = vector.load %arg3[%c0_5, %c0_6] : memref<1x128xf32, #tpu.memory_space<vmem>>, vector<1x128xf32>
    %5 = vector.broadcast %4 : vector<1x128xf32> to vector<8x128xf32>
    %6 = arith.addf %3, %5 : vector<8x128xf32>
    %cst_7 = arith.constant 0.000000e+00 : f32
    %7 = vector.broadcast %cst_7 : f32 to vector<8x128xf32>
    %8 = arith.maximumf %6, %7 : vector<8x128xf32>
    %cst_8 = arith.constant dense<0.000000e+00> : vector<8x128xf32>
    %9 = tpu.matmul %8, %2, %cst_8 {dimension_numbers = #tpu.dot_dimension_numbers<[1], [0], [0], [1], [0, 0, 1, 1], [], []>} : vector<8x128xf32>, vector<128x128xf32>, vector<8x128xf32> -> vector<8x128xf32>
    %c0_9 = arith.constant 0 : index
    %c0_10 = arith.constant 0 : index
    %10 = vector.load %arg5[%c0_9, %c0_10] : memref<1x128xf32, #tpu.memory_space<vmem>>, vector<1x128xf32>
    %11 = vector.broadcast %10 : vector<1x128xf32> to vector<8x128xf32>
    %12 = arith.addf %9, %11 : vector<8x128xf32>
    %cst_11 = arith.constant dense<0xFF800000> : vector<8xf32>
    %13 = vector.multi_reduction <maximumf>, %12, %cst_11 [1] : vector<8x128xf32> to vector<8xf32>
    %14 = vector.shape_cast %13 : vector<8xf32> to vector<8x1xf32>
    %15 = vector.broadcast %14 : vector<8x1xf32> to vector<8x128xf32>
    %16 = arith.subf %12, %15 : vector<8x128xf32>
    %17 = math.exp %16 : vector<8x128xf32>
    %cst_12 = arith.constant dense<0.000000e+00> : vector<8xf32>
    %18 = vector.multi_reduction <add>, %17, %cst_12 [1] : vector<8x128xf32> to vector<8xf32>
    %19 = vector.shape_cast %18 : vector<8xf32> to vector<8x1xf32>
    %20 = math.log %19 : vector<8x1xf32>
    %21 = vector.broadcast %20 : vector<8x1xf32> to vector<8x128xf32>
    %22 = arith.subf %16, %21 : vector<8x128xf32>
    %c0_13 = arith.constant 0 : index
    %c0_14 = arith.constant 0 : index
    %23 = vector.load %arg6[%c0_13, %c0_14] : memref<8x128xf32, #tpu.memory_space<vmem>>, vector<8x128xf32>
    tpu.vector_store %arg6[%c0_13, %c0_14], %22 {strides = array<i32>} : memref<8x128xf32, #tpu.memory_space<vmem>>, vector<8x128xf32>,
    return
  }
  func.func @transform_0(%arg0: i32) -> (i32, i32) {
    %c0_i32 = arith.constant 0 : i32
    %c0_i32_0 = arith.constant 0 : i32
    return %arg0, %c0_i32 : i32, i32
  }
  func.func @transform_1(%arg0: i32) -> (i32, i32) {
    %c0_i32 = arith.constant 0 : i32
    %c0_i32_0 = arith.constant 0 : i32
    %c0_i32_1 = arith.constant 0 : i32
    return %c0_i32, %c0_i32_0 : i32, i32
  }
  func.func @transform_2(%arg0: i32) -> (i32, i32) {
    %c0_i32 = arith.constant 0 : i32
    %c0_i32_0 = arith.constant 0 : i32
    %c0_i32_1 = arith.constant 0 : i32
    return %c0_i32, %c0_i32_0 : i32, i32
  }
  func.func @transform_3(%arg0: i32) -> (i32, i32) {
    %c0_i32 = arith.constant 0 : i32
    %c0_i32_0 = arith.constant 0 : i32
    %c0_i32_1 = arith.constant 0 : i32
    return %c0_i32, %c0_i32_0 : i32, i32
  }
  func.func @transform_4(%arg0: i32) -> (i32, i32) {
    %c0_i32 = arith.constant 0 : i32
    %c0_i32_0 = arith.constant 0 : i32
    %c0_i32_1 = arith.constant 0 : i32
    return %c0_i32, %c0_i32_0 : i32, i32
  }
  func.func @transform_5(%arg0: i32) -> (i32, i32) {
    %c0_i32 = arith.constant 0 : i32
    %c0_i32_0 = arith.constant 0 : i32
    return %arg0, %c0_i32 : i32, i32
  }
}

module attributes {stable_mosaic.version = 11 : i64} {
  func.func @mlp_kernel(%arg0: i32, %arg1: memref<8x16xf32, #tpu.memory_space<vmem>>, %arg2: memref<16x128xf32, #tpu.memory_space<vmem>>, %arg3: memref<1x128xf32, #tpu.memory_space<vmem>>, %arg4: memref<128x128xf32, #tpu.memory_space<vmem>>, %arg5: memref<1x128xf32, #tpu.memory_space<vmem>>, %arg6: memref<8x128xf32, #tpu.memory_space<vmem>>) attributes {dimension_semantics = [#tpu.dimension_semantics<parallel>], iteration_bounds = array<i64: 2>, scalar_prefetch = 0 : i64, scratch_operands = 0 : i64, tpu.core_type = #tpu.core_type<tc>, window_params = [{transform_indices = @transform_0, window_bounds = array<i64: 8, 16>}, {pipeline_mode = #tpu.pipeline_mode<synchronous>, transform_indices = @transform_1, window_bounds = array<i64: 16, 128>}, {pipeline_mode = #tpu.pipeline_mode<synchronous>, transform_indices = @transform_2, window_bounds = array<i64: 1, 128>}, {pipeline_mode = #tpu.pipeline_mode<synchronous>, transform_indices = @transform_3, window_bounds = array<i64: 128, 128>}, {pipeline_mode = #tpu.pipeline_mode<synchronous>, transform_indices = @transform_4, window_bounds = array<i64: 1, 128>}, {transform_indices = @transform_5, window_bounds = array<i64: 8, 128>}]} {
    %c0 = arith.constant 0 : index
    %c0_0 = arith.constant 0 : index
    %0 = vector.load %arg1[%c0, %c0_0] : memref<8x16xf32, #tpu.memory_space<vmem>>, vector<8x16xf32>
    %c0_1 = arith.constant 0 : index
    %c0_2 = arith.constant 0 : index
    %1 = vector.load %arg2[%c0_1, %c0_2] : memref<16x128xf32, #tpu.memory_space<vmem>>, vector<16x128xf32>
    %c0_3 = arith.constant 0 : index
    %c0_4 = arith.constant 0 : index
    %2 = vector.load %arg4[%c0_3, %c0_4] : memref<128x128xf32, #tpu.memory_space<vmem>>, vector<128x128xf32>
    %cst = arith.constant dense<0.000000e+00> : vector<8x128xf32>
    %3 = tpu.matmul %0, %1, %cst {dimension_numbers = #tpu.dot_dimension_numbers<[1], [0], [0], [1], [0, 0, 1, 1], [], []>} : vector<8x16xf32>, vector<16x128xf32>, vector<8x128xf32> -> vector<8x128xf32>
    %c0_5 = arith.constant 0 : index
    %c0_6 = arith.constant 0 : index
    %4 = vector.load %arg3[%c0_5, %c0_6] : memref<1x128xf32, #tpu.memory_space<vmem>>, vector<1x128xf32>
    %5 = vector.broadcast %4 : vector<1x128xf32> to vector<8x128xf32>
    %6 = arith.addf %3, %5 : vector<8x128xf32>
    %cst_7 = arith.constant 0.000000e+00 : f32
    %7 = vector.broadcast %cst_7 : f32 to vector<8x128xf32>
    %8 = arith.maximumf %6, %7 : vector<8x128xf32>
    %cst_8 = arith.constant dense<0.000000e+00> : vector<8x128xf32>
    %9 = tpu.matmul %8, %2, %cst_8 {dimension_numbers = #tpu.dot_dimension_numbers<[1], [0], [0], [1], [0, 0, 1, 1], [], []>} : vector<8x128xf32>, vector<128x128xf32>, vector<8x128xf32> -> vector<8x128xf32>
    %c0_9 = arith.constant 0 : index
    %c0_10 = arith.constant 0 : index
    %10 = vector.load %arg5[%c0_9, %c0_10] : memref<1x128xf32, #tpu.memory_space<vmem>>, vector<1x128xf32>
    %11 = vector.broadcast %10 : vector<1x128xf32> to vector<8x128xf32>
    %12 = arith.addf %9, %11 : vector<8x128xf32>
    %cst_11 = arith.constant dense<0xFF800000> : vector<8xf32>
    %13 = vector.multi_reduction <maximumf>, %12, %cst_11 [1] : vector<8x128xf32> to vector<8xf32>
    %14 = vector.shape_cast %13 : vector<8xf32> to vector<8x1xf32>
    %15 = vector.broadcast %14 : vector<8x1xf32> to vector<8x128xf32>
    %16 = arith.subf %12, %15 : vector<8x128xf32>
    %17 = math.exp %16 : vector<8x128xf32>
    %cst_12 = arith.constant dense<0.000000e+00> : vector<8xf32>
    %18 = vector.multi_reduction <add>, %17, %cst_12 [1] : vector<8x128xf32> to vector<8xf32>
    %19 = vector.shape_cast %18 : vector<8xf32> to vector<8x1xf32>
    %20 = math.log %19 : vector<8x1xf32>
    %21 = vector.broadcast %20 : vector<8x1xf32> to vector<8x128xf32>
    %22 = arith.subf %16, %21 : vector<8x128xf32>
    %c0_13 = arith.constant 0 : index
    %c0_14 = arith.constant 0 : index
    %23 = vector.load %arg6[%c0_13, %c0_14] : memref<8x128xf32, #tpu.memory_space<vmem>>, vector<8x128xf32>
    tpu.vector_store %arg6[%c0_13, %c0_14], %22 {strides = array<i32>} : memref<8x128xf32, #tpu.memory_space<vmem>>, vector<8x128xf32>,
    return
  }
  func.func @transform_0(%arg0: i32) -> (i32, i32) {
    %c0_i32 = arith.constant 0 : i32
    %c0_i32_0 = arith.constant 0 : i32
    return %arg0, %c0_i32 : i32, i32
  }
  func.func @transform_1(%arg0: i32) -> (i32, i32) {
    %c0_i32 = arith.constant 0 : i32
    %c0_i32_0 = arith.constant 0 : i32
    %c0_i32_1 = arith.constant 0 : i32
    return %c0_i32, %c0_i32_0 : i32, i32
  }
  func.func @transform_2(%arg0: i32) -> (i32, i32) {
    %c0_i32 = arith.constant 0 : i32
    %c0_i32_0 = arith.constant 0 : i32
    %c0_i32_1 = arith.constant 0 : i32
    return %c0_i32, %c0_i32_0 : i32, i32
  }
  func.func @transform_3(%arg0: i32) -> (i32, i32) {
    %c0_i32 = arith.constant 0 : i32
    %c0_i32_0 = arith.constant 0 : i32
    %c0_i32_1 = arith.constant 0 : i32
    return %c0_i32, %c0_i32_0 : i32, i32
  }
  func.func @transform_4(%arg0: i32) -> (i32, i32) {
    %c0_i32 = arith.constant 0 : i32
    %c0_i32_0 = arith.constant 0 : i32
    %c0_i32_1 = arith.constant 0 : i32
    return %c0_i32, %c0_i32_0 : i32, i32
  }
  func.func @transform_5(%arg0: i32) -> (i32, i32) {
    %c0_i32 = arith.constant 0 : i32
    %c0_i32_0 = arith.constant 0 : i32
    return %arg0, %c0_i32 : i32, i32
  }
}

</mosaic_0001>

<bundles_post_ra>
// kernel: tpu_custom_call.1
= control target key start
LH: loop header
LB: loop body
LE: loop exit
PB: predicated region body
PF: predicated region fallthrough
CT: control target
= control target key end

     0   :  { %10 = vsyncpa [#allocation3], 0  ;;  %s906_s0 = inlined_call_operand.hbm [shape: f32[12,16], index: 0, kind: input, shape index: {}]   ;;  %s907_s1 = inlined_call_operand.hbm [shape: f32[16,128], index: 1, kind: input, shape index: {}]   ;;  %s908_s2 = inlined_call_operand.vmem [shape: f32[1,128], index: 2, kind: input, shape index: {}]   ;;  %s909_s3 = inlined_call_operand.hbm [shape: f32[128,128], index: 3, kind: input, shape index: {}]   ;;  %s910_s4 = inlined_call_operand.vmem [shape: f32[1,128], index: 4, kind: input, shape index: {}]   ;;  %s911_s5 = inlined_call_operand.hbm [shape: f32[12,128], index: 5, kind: output, shape index: {}]  }
   0x1   :  { %12 = vsyncpa [#allocation3 + $0x1], 0 }
   0x2   :  { %13 = vsyncpa [#allocation6], 0 }
   0x3   :  { %14 = vsyncpa [#allocation4], 0 }
   0x4   :  { %16 = vsyncpa [#allocation4 + $0x1], 0  ;;  %s751_s18 = smov 0   ;;  %s753_s19 = smov 0  }
   0x5   :  { %s755_s20 = smov 0   ;;  %s757_s21 = smov 0  }
   0x6 LB: > { %s174_s24 = sshll.u32 %s907_s1, 4  ;;  %s775_s25 = sadd.s32 4294967295, %s715_s21   ;;  %s715_s21 = sphi %s757_s21, %s922_s21   ;;  %s711_s20 = sphi %s755_s20, %s921_s20   ;;  %s707_s19 = sphi %s753_s19, %s920_s19   ;;  %s703_s18 = sphi %s751_s18, %s919_s18   ;;  %s175_s24 = int_to_ptr.hbm [resolvable:$true] %s174_s24 }
   0x7   : > { %p464_p0 = scmp.ge.s32.totalorder %s715_s21, 1  ;;  %p43_p1 = scmp.eq.s32.totalorder %s775_s25, 0 }
   0x8   : > { %p163_p2 = scmp.lt.s32.totalorder %s715_s21, 3  ;;  %s717_s27 = smov [#allocation5]  }
   0x9   : > { %s176_s28 = sshll.u32 %s717_s27, 4  ;;  %s191_s6 = sshll.u32 %s909_s3, 4  ;;  %s177_s28 = int_to_ptr.vmem [resolvable:$true] %s176_s28  ;;  %s192_s6 = int_to_ptr.hbm [resolvable:$true] %s191_s6 }
   0xa   : > { %p780_p3 = pnand %p464_p0, %p163_p2  ;;  %s718_s7 = smov [#allocation7]  }
   0xb   : > { %s193_s8 = sshll.u32 %s718_s7, 4  ;;  %s719_s9 = smov 128   ;;  %s194_s8 = int_to_ptr.vmem [resolvable:$true] %s193_s8 }
   0xc   : > { %p492_p4 = pneg %p780_p3  ;;  %s720_s10 = smov 8  }
   0xd   : > { %s463_s11 = sadd.s32 4294967294, %s715_s21   ;;  %s794_s12 = sadd.s32 1, %s715_s21  }
   0xe   : > { %p493_p6 = pnand %p492_p4, %p43_p1  ;;  %s26_s13 = ssub.s32 %s715_s21, %s794_s12 }
   0xf   : > { %s29_s14 = sadd.s32 1, %s711_s20  ;;  %p27_p7 = scmp.eq.s32.totalorder %s26_s13, 0 }
  0x10   : > { %495 = dma.hbm_to_vmem [thread:$0]  (!%p493_p6), %s175_s24, 256, %s177_s28, [#allocation6], %s719_s9, %s719_s9, %s720_s10  }
  0x11   : > { %498 = dma.hbm_to_vmem [thread:$0]  (!%p493_p6), %s192_s6, 2048, %s194_s8, [#allocation6], %s719_s9, %s719_s9, %s720_s10  }
  0x12   : > { %p36_p8 = scmp.ne.s32.totalorder %s711_s20, %s707_s19  ;;  %p37_p9 = scmp.eq.s32.totalorder %s715_s21, 0 }
  0x13   : > { %p42_p10 = scmp.ne.s32.totalorder %s707_s19, %s703_s18  ;;  %p150_p13 = scmp.eq.s32.totalorder %s775_s25, 1 }
  0x14   : > { %s805_s15 = scalar_select %p27_p7, %s711_s20, %s29_s14  }
  0x15   : > { %p807_p11 = por %p37_p9, %p36_p8  ;;  %p813_p12 = por %p43_p1, %p42_p10 }
  0x16   : > { %p156_p0 = scmp.eq.s32.totalorder %s463_s11, 1  ;;  %p509_p2 = scmp.lt.s32.totalorder %s715_s21, 2 }
  0x17   : > { %s210_s22 = sand.u32 1, %s711_s20   ;;  %p820_p4 = por %p150_p13, %p36_p8 }
  0x18   : > { %p824_p6 = por %p156_p0, %p42_p10  ;;  %s468_s27 = sshll.u32 %s210_s22, 3 }
  0x19   : > { %s469_s28 = sshll.u32 %s715_s21, 3  ;;  %s214_s7 = scalar_lea.vmem [#allocation2], %s468_s27 }
  0x1a   : > { %s218_s6 = scalar_lea.hbm %s906_s0, %s469_s28  ;;  %s222_s8 = sshll.u32 %s214_s7, 4  ;;  %s223_s8 = int_to_ptr.vmem [resolvable:$true] %s222_s8 }
  0x1b   : > { %s220_s9 = sshll.u32 %s218_s6, 4  ;;  %p834_p7 = pnand %p509_p2, %p807_p11  ;;  %s221_s9 = int_to_ptr.hbm [resolvable:$true] %s220_s9 }
  0x1c   : > { %s211_s11 = scalar_lea.sflag [#allocation3], %s210_s22  ;;  %s615_s13 = sshra.s32 %s221_s9, 4  ;;  %s616_s13 = int_to_ptr.hbm [resolvable:$true] %s615_s13 }
  0x1d   : > { %s617_s14 = scalar_lea.hbm %s616_s13, 8  ;;  %p619_p9 = pneg %p834_p7 }
  0x1e   : > { %p618_p8 = scmp.ne.s32.totalorder %s616_s13, %s617_s14  ;;  %s622_s29 = scalar_lea.hbm %s906_s0, 16 }
  0x1f   : > { %p623_p11 = scmp.lt.s32.totalorder %s616_s13, %s906_s0  ;;  %p624_p0 = scmp.lt.s32.totalorder %s622_s29, %s617_s14 }
  0x20   : > { %p620_p10 = pnand %p619_p9, %p618_p8 }
  0x21   : > { %p625_p2 = por %p624_p0, %p623_p11 }
  0x22   : > { %p621_p13 = pneg %p620_p10 }
  0x24   : > { %p626_p5 = pnand %p625_p2, %p621_p13 }
  0x26   : > { %629 = shalt.err (!%p626_p5)
}
  0x27   : > { %502 = dma.hbm_to_vmem [thread:$0]  (!%p834_p7), %s221_s9, 128, %s223_s8, %s211_s11  }
  0x28   : > { %231 = sbr.rel (%p780_p3) target bundleno = 567 (0x237), region = 40  ;;  %s851_s22 = sand.u32 (!%p780_p3), 1, %s707_s19  }
  0x29   : > { %s471_s6 = sshll.u32 (!%p780_p3), %s851_s22, 3  ;;  %s234_s7 = scalar_lea.sflag (!%p780_p3), [#allocation3], %s851_s22 }
  0x2a   : > { %s237_s13 = scalar_lea.vmem (!%p780_p3), [#allocation2], %s471_s6 }
  0x2d   : > { %690 = dma.done.wait (%p813_p12), %s234_s7, 128  }
  0x2e   : > { %692 = vsyncadd (%p813_p12), %s234_s7, 4294967168 }
  0x2f   : > { %694 = dma.done.wait (%p43_p1), [#allocation6], 2304  }
  0x30   : > { %696 = vsyncadd (%p43_p1), [#allocation6], 4294964992  ;;  %v277_v0 = vld [vmem:[#allocation5 + $0x8] sm:$0xff]  ;;  %v276_v1 = vld [vmem:[#allocation5] sm:$0xff]  ;;  %vm298_vm0 = vcmask 130048   ;;  %s477_s10 = sshll.u32 %s775_s25, 3 }
  0x31   : > { %316 = vmatpush.msra.mxu0 %v277_v0  ;;  %v275_v2 = vld [vmem:[%s237_s13] sm:$0xff]  ;;  %v293_v3 = vld [vmem:[#allocation7 + $0x78] sm:$0xff]  ;;  %v292_v4 = vld [vmem:[#allocation7 + $0x70] sm:$0xff]  ;;  %s369_s27 = scalar_lea.hbm %s911_s5, %s477_s10  ;;  %s274_s28 = scalar_lea.vmem [#allocation8], %s471_s6 }
  0x32   : > { %327 = vmatpush.msra.mxu1 %v293_v3  ;;  %v291_v5 = vld [vmem:[#allocation7 + $0x68] sm:$0xff]  ;;  %v290_v6 = vld [vmem:[#allocation7 + $0x60] sm:$0xff]  ;;  %v289_v7 = vld [vmem:[#allocation7 + $0x58] sm:$0xff]  ;;  %s371_s29 = sshll.u32 %s274_s28, 4  ;;  %s373_s30 = sshll.u32 %s369_s27, 4  ;;  %s372_s29 = int_to_ptr.vmem [resolvable:$true] %s371_s29  ;;  %s374_s30 = int_to_ptr.hbm [resolvable:$true] %s373_s30 }
  0x33   : > { %317 = vmatpush.msra.mxu0 %v276_v1  ;;  %v288_v8 = vld [vmem:[#allocation7 + $0x50] sm:$0xff]  ;;  %v287_v9 = vld [vmem:[#allocation7 + $0x48] sm:$0xff]  ;;  %v286_v10 = vld [vmem:[#allocation7 + $0x40] sm:$0xff]  ;;  %s359_s16 = scalar_lea.sflag [#allocation4], %s851_s22  ;;  %s659_s7 = sshra.s32 %s374_s30, 4  ;;  %s660_s7 = int_to_ptr.hbm [resolvable:$true] %s659_s7 }
  0x34   : > { %475 = vmatmul.msk.f32.vlgmr.msra.gmra.mxu0 %vm298_vm0, %v275_v2  ;;  %328 = vmatpush.msra.mxu1 %v292_v4  ;;  %v285_v11 = vld [vmem:[#allocation7 + $0x38] sm:$0xff]  ;;  %v284_v12 = vld [vmem:[#allocation7 + $0x30] sm:$0xff]  ;;  %v283_v13 = vld [vmem:[#allocation7 + $0x28] sm:$0xff]  ;;  %s661_s13 = scalar_lea.hbm %s660_s7, 8  ;;  %s665_s17 = scalar_lea.hbm %s911_s5, 16 }
  0x35   : > { %v282_v14 = vld [vmem:[#allocation7 + $0x20] sm:$0xff]  ;;  %v281_v15 = vld [vmem:[#allocation7 + $0x18] sm:$0xff]  ;;  %v280_v16 = vld [vmem:[#allocation7 + $0x10] sm:$0xff]  ;;  %p662_p1 = scmp.ne.s32.totalorder %s660_s7, %s661_s13  ;;  %p666_p12 = scmp.lt.s32.totalorder %s660_s7, %s911_s5 }
  0x36   : > { %329 = vmatpush.msra.mxu1 %v291_v5  ;;  %v279_v17 = vld [vmem:[#allocation7 + $0x8] sm:$0xff]  ;;  %v278_v18 = vld [vmem:[#allocation7] sm:$0xff]  ;;  %p667_p7 = scmp.lt.s32.totalorder %s665_s17, %s661_s13 }
  0x37   : > { %v549_v19 = vld [vmem:[%s908_s2] ss:$0 sm:$0xff]  ;;  %p663_p3 = pnand %p662_p1, %p820_p4 }
  0x38   : > { %330 = vmatpush.msra.mxu1 %v290_v6  ;;  %v550_v23 = vld [vmem:[%s910_s4] ss:$0 sm:$0xff]  ;;  %p668_p8 = por %p667_p7, %p666_p12 }
  0x39   : > { %p664_p5 = pneg %p663_p3 }
  0x3a   : > { %331 = vmatpush.msra.mxu1 %v289_v7 }
  0x3b   : > { %p669_p9 = pnand %p668_p8, %p664_p5 }
  0x3c   : > { %332 = vmatpush.msra.mxu1 %v288_v8 }
  0x3e   : > { %333 = vmatpush.msra.mxu1 %v287_v9 }
  0x40   : > { %334 = vmatpush.msra.mxu1 %v286_v10 }
  0x42   : > { %335 = vmatpush.msra.mxu1 %v285_v11 }
  0x44   : > { %336 = vmatpush.msra.mxu1 %v284_v12 }
  0x46   : > { %337 = vmatpush.msra.mxu1 %v283_v13 }
  0x48   : > { %338 = vmatpush.msra.mxu1 %v282_v14 }
  0x4a   : > { %339 = vmatpush.msra.mxu1 %v281_v15 }
  0x4c   : > { %340 = vmatpush.msra.mxu1 %v280_v16 }
  0x4e   : > { %341 = vmatpush.msra.mxu1 %v279_v17 }
  0x50   : > { %342 = vmatpush.msra.mxu1 %v278_v18 }
  0xb1   : > { %v319_v20 = vpop.f32.mrf.mxu0 }
  0xb2   : > { %v320_v21 = vadd.f32 %v549_v19, %v319_v20 }
  0xb4   : > { %v322_v22 = vmax.f32 %v320_v21, 0.0 }
  0xb6   : > { %343 = vmatmul.f32.vlgmr.msra.gmra.mxu1 %v322_v22 }
 0x133   : > { %v344_v24 = vpop.f32.mrf.mxu1 }
 0x134   : > { %v345_v25 = vadd.f32 %v550_v23, %v344_v24 }
 0x136   : > { %347 = vmax.xlane.f32.xlu0 %v345_v25 }
 0x1a9   : > { %v348_v26 = vpop.xlane.xlu0 %347 }
 0x1aa   : > { %v349_v27 = vsub.f32 %v345_v25, %v348_v26 }
 0x1ac   : > { %v350_v28 = vmul.f32 1.442695, %v349_v27 }
 0x1ae   : > { %551 = vpow2.f32 %v350_v28 }
 0x1b4   : > { %v552_v29 = vpop.eup %551 }
 0x1b5   : > { %352 = vadd.xlane.f32.xlu0 %v552_v29 }
 0x228   : > { %v353_v30 = vpop.xlane.xlu0 %352 }
 0x229   : > { %553 = vlog2.f32 %v353_v30 }
 0x22f   : > { %v554_v31 = vpop.eup %553 }
 0x230   : > { %v355_v32 = vmul.f32 0.6931472, %v554_v31 }
 0x232   : > { %v356_v33 = vsub.f32 %v349_v27, %v355_v32 }
 0x234   : > { %357 = vst [vmem:[%s274_s28] sm:$0xff] %v356_v33 }
 0x235   : > { %672 = shalt.err (!%p669_p9)
}
 0x236   : > { %490 = dma.vmem_to_hbm [thread:$0]  (%p820_p4), %s372_s29, 128, %s374_s30, %s359_s16  }
 0x237 PF: > { %s385_s22 = sand.u32 1, %s703_s18   ;;  %p918_p10 = scmp.ge.s32.totalorder %s715_s21, 2 }
 0x238   : > { %s386_s9 = scalar_lea.sflag [#allocation4], %s385_s22 }
 0x239   : > { %p504_p13 = pnand %p918_p10, %p824_p6 }
 0x23b   : > { %p505_p11 = pneg %p504_p13 }
 0x23d   : > { %698 = dma.done.wait (%p505_p11), %s386_s9, 128  }
 0x23e   : > { %700 = vsyncadd (%p505_p11), %s386_s9, 4294967168  ;;  %p19_p0 = scmp.ge.s32.totalorder %s794_s12, 4   ;;  %s919_s18 = smov %s707_s19 }
 0x23f   : > { %s920_s19 = smov %s711_s20  ;;  %s921_s20 = smov %s805_s15 }
 0x240   : > { %s922_s21 = smov %s794_s12  ;;  %21 = sbr.rel (!%p19_p0) target bundleno = 6 (0x6), region = 93 }
 0x245   :  { %392 = vsyncpa [#allocation3], 1 }
 0x246   :  { %394 = vsyncpa [#allocation3 + $0x1], 1 }
 0x247   :  { %395 = vsyncpa [#allocation6], 1 }
 0x248   :  { %396 = vsyncpa [#allocation4], 1 }
 0x249   :  { %398 = vsyncpa [#allocation4 + $0x1], 1 }

// kernel: tpu_custom_call.1
= control target key start
LH: loop header
LB: loop body
LE: loop exit
PB: predicated region body
PF: predicated region fallthrough
CT: control target
= control target key end

     0   :  { %10 = vsyncpa [#allocation3], 0  ;;  %s906_s0 = inlined_call_operand.hbm [shape: f32[12,16], index: 0, kind: input, shape index: {}]   ;;  %s907_s1 = inlined_call_operand.hbm [shape: f32[16,128], index: 1, kind: input, shape index: {}]   ;;  %s908_s2 = inlined_call_operand.vmem [shape: f32[1,128], index: 2, kind: input, shape index: {}]   ;;  %s909_s3 = inlined_call_operand.hbm [shape: f32[128,128], index: 3, kind: input, shape index: {}]   ;;  %s910_s4 = inlined_call_operand.vmem [shape: f32[1,128], index: 4, kind: input, shape index: {}]   ;;  %s911_s5 = inlined_call_operand.hbm [shape: f32[12,128], index: 5, kind: output, shape index: {}]  }
   0x1   :  { %12 = vsyncpa [#allocation3 + $0x1], 0 }
   0x2   :  { %13 = vsyncpa [#allocation6], 0 }
   0x3   :  { %14 = vsyncpa [#allocation4], 0 }
   0x4   :  { %16 = vsyncpa [#allocation4 + $0x1], 0  ;;  %s751_s18 = smov 0   ;;  %s753_s19 = smov 0  }
   0x5   :  { %s755_s20 = smov 0   ;;  %s757_s21 = smov 0  }
   0x6 LB: > { %s174_s24 = sshll.u32 %s907_s1, 4  ;;  %s775_s25 = sadd.s32 4294967295, %s715_s21   ;;  %s715_s21 = sphi %s757_s21, %s922_s21   ;;  %s711_s20 = sphi %s755_s20, %s921_s20   ;;  %s707_s19 = sphi %s753_s19, %s920_s19   ;;  %s703_s18 = sphi %s751_s18, %s919_s18   ;;  %s175_s24 = int_to_ptr.hbm [resolvable:$true] %s174_s24 }
   0x7   : > { %p464_p0 = scmp.ge.s32.totalorder %s715_s21, 1  ;;  %p43_p1 = scmp.eq.s32.totalorder %s775_s25, 0 }
   0x8   : > { %p163_p2 = scmp.lt.s32.totalorder %s715_s21, 3  ;;  %s717_s27 = smov [#allocation5]  }
   0x9   : > { %s176_s28 = sshll.u32 %s717_s27, 4  ;;  %s191_s6 = sshll.u32 %s909_s3, 4  ;;  %s177_s28 = int_to_ptr.vmem [resolvable:$true] %s176_s28  ;;  %s192_s6 = int_to_ptr.hbm [resolvable:$true] %s191_s6 }
   0xa   : > { %p780_p3 = pnand %p464_p0, %p163_p2  ;;  %s718_s7 = smov [#allocation7]  }
   0xb   : > { %s193_s8 = sshll.u32 %s718_s7, 4  ;;  %s719_s9 = smov 128   ;;  %s194_s8 = int_to_ptr.vmem [resolvable:$true] %s193_s8 }
   0xc   : > { %p492_p4 = pneg %p780_p3  ;;  %s720_s10 = smov 8  }
   0xd   : > { %s463_s11 = sadd.s32 4294967294, %s715_s21   ;;  %s794_s12 = sadd.s32 1, %s715_s21  }
   0xe   : > { %p493_p6 = pnand %p492_p4, %p43_p1  ;;  %s26_s13 = ssub.s32 %s715_s21, %s794_s12 }
   0xf   : > { %s29_s14 = sadd.s32 1, %s711_s20  ;;  %p27_p7 = scmp.eq.s32.totalorder %s26_s13, 0 }
  0x10   : > { %495 = dma.hbm_to_vmem [thread:$0]  (!%p493_p6), %s175_s24, 256, %s177_s28, [#allocation6], %s719_s9, %s719_s9, %s720_s10  }
  0x11   : > { %498 = dma.hbm_to_vmem [thread:$0]  (!%p493_p6), %s192_s6, 2048, %s194_s8, [#allocation6], %s719_s9, %s719_s9, %s720_s10  }
  0x12   : > { %p36_p8 = scmp.ne.s32.totalorder %s711_s20, %s707_s19  ;;  %p37_p9 = scmp.eq.s32.totalorder %s715_s21, 0 }
  0x13   : > { %p42_p10 = scmp.ne.s32.totalorder %s707_s19, %s703_s18  ;;  %p150_p13 = scmp.eq.s32.totalorder %s775_s25, 1 }
  0x14   : > { %s805_s15 = scalar_select %p27_p7, %s711_s20, %s29_s14  }
  0x15   : > { %p807_p11 = por %p37_p9, %p36_p8  ;;  %p813_p12 = por %p43_p1, %p42_p10 }
  0x16   : > { %p156_p0 = scmp.eq.s32.totalorder %s463_s11, 1  ;;  %p509_p2 = scmp.lt.s32.totalorder %s715_s21, 2 }
  0x17   : > { %s210_s22 = sand.u32 1, %s711_s20   ;;  %p820_p4 = por %p150_p13, %p36_p8 }
  0x18   : > { %p824_p6 = por %p156_p0, %p42_p10  ;;  %s468_s27 = sshll.u32 %s210_s22, 3 }
  0x19   : > { %s469_s28 = sshll.u32 %s715_s21, 3  ;;  %s214_s7 = scalar_lea.vmem [#allocation2], %s468_s27 }
  0x1a   : > { %s218_s6 = scalar_lea.hbm %s906_s0, %s469_s28  ;;  %s222_s8 = sshll.u32 %s214_s7, 4  ;;  %s223_s8 = int_to_ptr.vmem [resolvable:$true] %s222_s8 }
  0x1b   : > { %s220_s9 = sshll.u32 %s218_s6, 4  ;;  %p834_p7 = pnand %p509_p2, %p807_p11  ;;  %s221_s9 = int_to_ptr.hbm [resolvable:$true] %s220_s9 }
  0x1c   : > { %s211_s11 = scalar_lea.sflag [#allocation3], %s210_s22  ;;  %s615_s13 = sshra.s32 %s221_s9, 4  ;;  %s616_s13 = int_to_ptr.hbm [resolvable:$true] %s615_s13 }
  0x1d   : > { %s617_s14 = scalar_lea.hbm %s616_s13, 8  ;;  %p619_p9 = pneg %p834_p7 }
  0x1e   : > { %p618_p8 = scmp.ne.s32.totalorder %s616_s13, %s617_s14  ;;  %s622_s29 = scalar_lea.hbm %s906_s0, 16 }
  0x1f   : > { %p623_p11 = scmp.lt.s32.totalorder %s616_s13, %s906_s0  ;;  %p624_p0 = scmp.lt.s32.totalorder %s622_s29, %s617_s14 }
  0x20   : > { %p620_p10 = pnand %p619_p9, %p618_p8 }
  0x21   : > { %p625_p2 = por %p624_p0, %p623_p11 }
  0x22   : > { %p621_p13 = pneg %p620_p10 }
  0x24   : > { %p626_p5 = pnand %p625_p2, %p621_p13 }
  0x26   : > { %629 = shalt.err (!%p626_p5)
}
  0x27   : > { %502 = dma.hbm_to_vmem [thread:$0]  (!%p834_p7), %s221_s9, 128, %s223_s8, %s211_s11  }
  0x28   : > { %231 = sbr.rel (%p780_p3) target bundleno = 567 (0x237), region = 40  ;;  %s851_s22 = sand.u32 (!%p780_p3), 1, %s707_s19  }
  0x29   : > { %s471_s6 = sshll.u32 (!%p780_p3), %s851_s22, 3  ;;  %s234_s7 = scalar_lea.sflag (!%p780_p3), [#allocation3], %s851_s22 }
  0x2a   : > { %s237_s13 = scalar_lea.vmem (!%p780_p3), [#allocation2], %s471_s6 }
  0x2d   : > { %690 = dma.done.wait (%p813_p12), %s234_s7, 128  }
  0x2e   : > { %692 = vsyncadd (%p813_p12), %s234_s7, 4294967168 }
  0x2f   : > { %694 = dma.done.wait (%p43_p1), [#allocation6], 2304  }
  0x30   : > { %696 = vsyncadd (%p43_p1), [#allocation6], 4294964992  ;;  %v277_v0 = vld [vmem:[#allocation5 + $0x8] sm:$0xff]  ;;  %v276_v1 = vld [vmem:[#allocation5] sm:$0xff]  ;;  %vm298_vm0 = vcmask 130048   ;;  %s477_s10 = sshll.u32 %s775_s25, 3 }
  0x31   : > { %316 = vmatpush.msra.mxu0 %v277_v0  ;;  %v275_v2 = vld [vmem:[%s237_s13] sm:$0xff]  ;;  %v293_v3 = vld [vmem:[#allocation7 + $0x78] sm:$0xff]  ;;  %v292_v4 = vld [vmem:[#allocation7 + $0x70] sm:$0xff]  ;;  %s369_s27 = scalar_lea.hbm %s911_s5, %s477_s10  ;;  %s274_s28 = scalar_lea.vmem [#allocation8], %s471_s6 }
  0x32   : > { %327 = vmatpush.msra.mxu1 %v293_v3  ;;  %v291_v5 = vld [vmem:[#allocation7 + $0x68] sm:$0xff]  ;;  %v290_v6 = vld [vmem:[#allocation7 + $0x60] sm:$0xff]  ;;  %v289_v7 = vld [vmem:[#allocation7 + $0x58] sm:$0xff]  ;;  %s371_s29 = sshll.u32 %s274_s28, 4  ;;  %s373_s30 = sshll.u32 %s369_s27, 4  ;;  %s372_s29 = int_to_ptr.vmem [resolvable:$true] %s371_s29  ;;  %s374_s30 = int_to_ptr.hbm [resolvable:$true] %s373_s30 }
  0x33   : > { %317 = vmatpush.msra.mxu0 %v276_v1  ;;  %v288_v8 = vld [vmem:[#allocation7 + $0x50] sm:$0xff]  ;;  %v287_v9 = vld [vmem:[#allocation7 + $0x48] sm:$0xff]  ;;  %v286_v10 = vld [vmem:[#allocation7 + $0x40] sm:$0xff]  ;;  %s359_s16 = scalar_lea.sflag [#allocation4], %s851_s22  ;;  %s659_s7 = sshra.s32 %s374_s30, 4  ;;  %s660_s7 = int_to_ptr.hbm [resolvable:$true] %s659_s7 }
  0x34   : > { %475 = vmatmul.msk.f32.vlgmr.msra.gmra.mxu0 %vm298_vm0, %v275_v2  ;;  %328 = vmatpush.msra.mxu1 %v292_v4  ;;  %v285_v11 = vld [vmem:[#allocation7 + $0x38] sm:$0xff]  ;;  %v284_v12 = vld [vmem:[#allocation7 + $0x30] sm:$0xff]  ;;  %v283_v13 = vld [vmem:[#allocation7 + $0x28] sm:$0xff]  ;;  %s661_s13 = scalar_lea.hbm %s660_s7, 8  ;;  %s665_s17 = scalar_lea.hbm %s911_s5, 16 }
  0x35   : > { %v282_v14 = vld [vmem:[#allocation7 + $0x20] sm:$0xff]  ;;  %v281_v15 = vld [vmem:[#allocation7 + $0x18] sm:$0xff]  ;;  %v280_v16 = vld [vmem:[#allocation7 + $0x10] sm:$0xff]  ;;  %p662_p1 = scmp.ne.s32.totalorder %s660_s7, %s661_s13  ;;  %p666_p12 = scmp.lt.s32.totalorder %s660_s7, %s911_s5 }
  0x36   : > { %329 = vmatpush.msra.mxu1 %v291_v5  ;;  %v279_v17 = vld [vmem:[#allocation7 + $0x8] sm:$0xff]  ;;  %v278_v18 = vld [vmem:[#allocation7] sm:$0xff]  ;;  %p667_p7 = scmp.lt.s32.totalorder %s665_s17, %s661_s13 }
  0x37   : > { %v549_v19 = vld [vmem:[%s908_s2] ss:$0 sm:$0xff]  ;;  %p663_p3 = pnand %p662_p1, %p820_p4 }
  0x38   : > { %330 = vmatpush.msra.mxu1 %v290_v6  ;;  %v550_v23 = vld [vmem:[%s910_s4] ss:$0 sm:$0xff]  ;;  %p668_p8 = por %p667_p7, %p666_p12 }
  0x39   : > { %p664_p5 = pneg %p663_p3 }
  0x3a   : > { %331 = vmatpush.msra.mxu1 %v289_v7 }
  0x3b   : > { %p669_p9 = pnand %p668_p8, %p664_p5 }
  0x3c   : > { %332 = vmatpush.msra.mxu1 %v288_v8 }
  0x3e   : > { %333 = vmatpush.msra.mxu1 %v287_v9 }
  0x40   : > { %334 = vmatpush.msra.mxu1 %v286_v10 }
  0x42   : > { %335 = vmatpush.msra.mxu1 %v285_v11 }
  0x44   : > { %336 = vmatpush.msra.mxu1 %v284_v12 }
  0x46   : > { %337 = vmatpush.msra.mxu1 %v283_v13 }
  0x48   : > { %338 = vmatpush.msra.mxu1 %v282_v14 }
  0x4a   : > { %339 = vmatpush.msra.mxu1 %v281_v15 }
  0x4c   : > { %340 = vmatpush.msra.mxu1 %v280_v16 }
  0x4e   : > { %341 = vmatpush.msra.mxu1 %v279_v17 }
  0x50   : > { %342 = vmatpush.msra.mxu1 %v278_v18 }
  0xb1   : > { %v319_v20 = vpop.f32.mrf.mxu0 }
  0xb2   : > { %v320_v21 = vadd.f32 %v549_v19, %v319_v20 }
  0xb4   : > { %v322_v22 = vmax.f32 %v320_v21, 0.0 }
  0xb6   : > { %343 = vmatmul.f32.vlgmr.msra.gmra.mxu1 %v322_v22 }
 0x133   : > { %v344_v24 = vpop.f32.mrf.mxu1 }
 0x134   : > { %v345_v25 = vadd.f32 %v550_v23, %v344_v24 }
 0x136   : > { %347 = vmax.xlane.f32.xlu0 %v345_v25 }
 0x1a9   : > { %v348_v26 = vpop.xlane.xlu0 %347 }
 0x1aa   : > { %v349_v27 = vsub.f32 %v345_v25, %v348_v26 }
 0x1ac   : > { %v350_v28 = vmul.f32 1.442695, %v349_v27 }
 0x1ae   : > { %551 = vpow2.f32 %v350_v28 }
 0x1b4   : > { %v552_v29 = vpop.eup %551 }
 0x1b5   : > { %352 = vadd.xlane.f32.xlu0 %v552_v29 }
 0x228   : > { %v353_v30 = vpop.xlane.xlu0 %352 }
 0x229   : > { %553 = vlog2.f32 %v353_v30 }
 0x22f   : > { %v554_v31 = vpop.eup %553 }
 0x230   : > { %v355_v32 = vmul.f32 0.6931472, %v554_v31 }
 0x232   : > { %v356_v33 = vsub.f32 %v349_v27, %v355_v32 }
 0x234   : > { %357 = vst [vmem:[%s274_s28] sm:$0xff] %v356_v33 }
 0x235   : > { %672 = shalt.err (!%p669_p9)
}
 0x236   : > { %490 = dma.vmem_to_hbm [thread:$0]  (%p820_p4), %s372_s29, 128, %s374_s30, %s359_s16  }
 0x237 PF: > { %s385_s22 = sand.u32 1, %s703_s18   ;;  %p918_p10 = scmp.ge.s32.totalorder %s715_s21, 2 }
 0x238   : > { %s386_s9 = scalar_lea.sflag [#allocation4], %s385_s22 }
 0x239   : > { %p504_p13 = pnand %p918_p10, %p824_p6 }
 0x23b   : > { %p505_p11 = pneg %p504_p13 }
 0x23d   : > { %698 = dma.done.wait (%p505_p11), %s386_s9, 128  }
 0x23e   : > { %700 = vsyncadd (%p505_p11), %s386_s9, 4294967168  ;;  %p19_p0 = scmp.ge.s32.totalorder %s794_s12, 4   ;;  %s919_s18 = smov %s707_s19 }
 0x23f   : > { %s920_s19 = smov %s711_s20  ;;  %s921_s20 = smov %s805_s15 }
 0x240   : > { %s922_s21 = smov %s794_s12  ;;  %21 = sbr.rel (!%p19_p0) target bundleno = 6 (0x6), region = 93 }
 0x245   :  { %392 = vsyncpa [#allocation3], 1 }
 0x246   :  { %394 = vsyncpa [#allocation3 + $0x1], 1 }
 0x247   :  { %395 = vsyncpa [#allocation6], 1 }
 0x248   :  { %396 = vsyncpa [#allocation4], 1 }
 0x249   :  { %398 = vsyncpa [#allocation4 + $0x1], 1 }

</bundles_post_ra>
